<compile_context>
chip_gen: v7x
topology: tpu7x:2x2x1
jax: 0.10.0
libtpu: 0.0.40
codegen_flags: <defaults>
</compile_context>

<pallas_src>
import functools
import math

import jax
import jax.numpy as jnp
from jax import lax
from jax.experimental import pallas as pl
from jax.experimental.pallas import tpu as pltpu

LAYER_NORM_EPS = 1e-5          # typical RoBERTa config.layer_norm_eps
_LANE = 128                    # lane-dense decoder output width
_NUM_CLASSES = 2               # real logit count (first 2 lanes of the slab)
_INV_SQRT2 = 1.0 / math.sqrt(2.0)
_GELU_TANH_C = math.sqrt(2.0 / math.pi)


def _round_up(x, m):
    return (x + m - 1) // m * m


def _choose_tm(n_rows, tm_max):
    """Row-tile size: balance padding waste, per-grid-step overhead, and
    prefer >= 2 row tiles so the 'parallel' axis can split across v7x's 2 TCs."""
    best = None
    for tm in (512, 256, 128, 64, 32, 16, 8):
        if tm > max(tm_max, 8):
            continue
        n_pad = _round_up(n_rows, tm)
        n_tiles = n_pad // tm
        score = n_pad + 24 * n_tiles          # padded rows + per-tile overhead
        if n_tiles >= 2:
            score *= 0.75                     # enables 2-TensorCore split (v7x)
        key = (score, -tm)
        if best is None or key < best[0]:
            best = (key, tm, n_pad)
    return best[1], best[2]


def _epilogue(acc, b1, gamma, beta, w2, b2, *, eps, approx_gelu):
    """GELU -> LayerNorm -> decoder on an f32 (TM, H) matmul result."""
    h = acc + b1
    if approx_gelu:
        # tanh form: transcendental goes to the EUP slot (VALU relief on v6e/v7x)
        h = 0.5 * h * (1.0 + jnp.tanh(_GELU_TANH_C * (h + 0.044715 * h * h * h)))
    else:
        # exact GELU (matches torch.nn.GELU(approximate='none'))
        h = 0.5 * h * (1.0 + lax.erf(h * _INV_SQRT2))
    mean = jnp.mean(h, axis=-1, keepdims=True)
    c = h - mean
    var = jnp.mean(c * c, axis=-1, keepdims=True)
    # +eps keeps zero-padded rows (var == 0) finite; the wrapper slices them off.
    hn = c * lax.rsqrt(var + eps)
    hn = hn * gamma + beta
    # Decoder matmul in w2's dtype (bf16 when compute_dtype=bf16), f32 accumulate.
    logits = jnp.dot(hn.astype(w2.dtype), w2,
                     preferred_element_type=jnp.float32) + b2
    return logits


def _disc_kernel_fused(x_ref, w1_ref, b1_ref, gamma_ref, beta_ref,
                       w2_ref, b2_ref, o_ref, *, eps, approx_gelu):
    """kt == 1: W1 resident in VMEM, whole head in one grid step per row tile."""
    acc = jnp.dot(x_ref[...], w1_ref[...], preferred_element_type=jnp.float32)
    o_ref[...] = _epilogue(acc, b1_ref[...], gamma_ref[...], beta_ref[...],
                           w2_ref[...], b2_ref[...],
                           eps=eps, approx_gelu=approx_gelu).astype(o_ref.dtype)


def _disc_kernel_streamed(x_ref, w1_ref, b1_ref, gamma_ref, beta_ref,
                          w2_ref, b2_ref, o_ref, acc_ref, *, eps, approx_gelu):
    """kt > 1: W1 streamed in (tk, H) stripes; f32 VMEM accumulator."""
    k = pl.program_id(1)
    part = jnp.dot(x_ref[...], w1_ref[...], preferred_element_type=jnp.float32)

    @pl.when(k == 0)
    def _():
        acc_ref[...] = part                 # direct write: no zero-fill + add

    @pl.when(k > 0)
    def _():
        acc_ref[...] += part

    @pl.when(k == pl.num_programs(1) - 1)
    def _():
        o_ref[...] = _epilogue(acc_ref[...], b1_ref[...], gamma_ref[...],
                               beta_ref[...], w2_ref[...], b2_ref[...],
                               eps=eps, approx_gelu=approx_gelu
                               ).astype(o_ref.dtype)


def prepare_params(params, compute_dtype=None):
    """One-time parameter prep: transpose W1, pad decoder to 128 lanes,
    cast biases / LN params to f32 (hoisted out of the kernel).
    compute_dtype=jnp.bfloat16 enables the bf16 MXU fast path (the wrapper
    casts activations to the same dtype so BOTH matmul operands are bf16)."""
    H = params["dense_w"].shape[0]
    mm_dtype = jnp.dtype(compute_dtype) if compute_dtype is not None else jnp.dtype(jnp.float32)
    w1 = params["dense_w"].T.astype(mm_dtype)              # (H, H): x @ W1
    w2 = jnp.zeros((H, _LANE), mm_dtype)
    w2 = w2.at[:, :_NUM_CLASSES].set(params["dec_w"].T.astype(mm_dtype))
    b2 = jnp.zeros((1, _LANE), jnp.float32)
    b2 = b2.at[0, :_NUM_CLASSES].set(params["dec_b"].astype(jnp.float32))
    return {
        "w1": w1,
        "b1": params["dense_b"].astype(jnp.float32).reshape(1, H),
        "gamma": params["ln_w"].astype(jnp.float32).reshape(1, H),
        "beta": params["ln_b"].astype(jnp.float32).reshape(1, H),
        "w2": w2,
        "b2": b2,
    }


def discriminator_forward(features, prepared, *, eps=LAYER_NORM_EPS,
                          tm_max=256, tk_max=512, approx_gelu=False,
                          force_stream=False):
    """features: [..., H].  prepared: output of prepare_params.
    Returns logits [..., 2]."""
    orig_shape = features.shape
    H = orig_shape[-1]
    w1 = prepared["w1"]
    assert w1.shape == (H, H), (w1.shape, H)
    mm_dtype = w1.dtype                          # both matmul operands match
    x = features.reshape(-1, H).astype(mm_dtype)
    N = x.shape[0]
    out_dtype = features.dtype

    itb = jnp.dtype(mm_dtype).itemsize
    wtb = itb
    w2b = jnp.dtype(prepared["w2"].dtype).itemsize
    otb = jnp.dtype(out_dtype).itemsize

    # Generation-aware VMEM budget: <= ~85% of physical (leave compiler headroom
    # on v7x's 64 MiB), capped at 100 MiB on 128 MiB parts (v5e/v6e).
    try:
        phys = int(pltpu.get_tpu_info().vmem_capacity_bytes)
    except Exception:
        phys = 64 << 20                          # conservative (v7x) fallback
    vmem_cap = min(int(phys * 0.85), 100 << 20)

    params_bytes = 4 * (3 * H + _LANE) + H * _LANE * w2b   # single-buffered params

    def fused_vmem(tm):
        return (H * H * wtb                      # resident W1 (single-buffered)
                + 2 * tm * H * itb               # x tiles (double-buffered)
                + 2 * tm * _LANE * otb           # out tiles
                + params_bytes
                + 3 * tm * H * 4)                # f32 matmul result + epilogue temps

    def streamed_vmem(tm, tk):
        return (2 * tk * H * wtb                 # W1 stripes (double-buffered)
                + 2 * tm * tk * itb
                + 2 * tm * _LANE * otb
                + params_bytes
                + tm * H * 4                     # f32 accumulator scratch
                + 2 * tm * H * 4)                # epilogue temps

    tm, n_pad = _choose_tm(N, tm_max)
    tk, kt = H, 1
    if (force_stream or fused_vmem(tm) > vmem_cap) and H % 128 == 0 and H > 128:
        # W1 cannot stay resident: stream it, and use bigger row tiles so each
        # full re-stream of W1 from HBM is amortized over more rows.
        tm, n_pad = _choose_tm(N, max(tm_max, 512))
        tk_cap = max(128, min((tk_max // 128) * 128, H))
        divisors = [c for c in range(128, H, 128) if H % c == 0]
        allowed = [c for c in divisors if c <= tk_cap] or divisors
        tk = min(allowed)
        for c in sorted(allowed, reverse=True):
            if streamed_vmem(tm, c) <= vmem_cap:
                tk = c
                break
        while tm > 8 and streamed_vmem(tm, tk) > vmem_cap:
            tm //= 2
            n_pad = _round_up(N, tm)
        kt = H // tk

    if n_pad != N:
        x = jnp.pad(x, ((0, n_pad - N), (0, 0)))

    n_tiles = n_pad // tm
    est = fused_vmem(tm) if kt == 1 else streamed_vmem(tm, tk)
    vmem_limit = int(min(vmem_cap, max(2 * est, 32 << 20)))

    # W1 HBM traffic: once when resident (constant block index), per row tile
    # when streamed over the k axis.
    w1_hbm_bytes = H * H * wtb * (1 if kt == 1 else n_tiles)
    cost = pl.CostEstimate(
        flops=int(2 * n_pad * H * (H + _LANE)),
        transcendentals=int(n_pad * H),
        bytes_accessed=int(n_pad * H * itb + w1_hbm_bytes
                           + n_pad * _LANE * otb + params_bytes),
    )

    def _run(single_buffer):
        if kt == 1:
            def cspec(shape):
                if single_buffer:
                    return pl.BlockSpec(shape, lambda i: (0, 0),
                                        pipeline_mode=pl.Buffered(1))
                return pl.BlockSpec(shape, lambda i: (0, 0))
            grid = (n_tiles,)
            kernel = functools.partial(_disc_kernel_fused, eps=eps,
                                       approx_gelu=approx_gelu)
            in_specs = [
                pl.BlockSpec((tm, H), lambda i: (i, 0)),      # x row tile
                cspec((H, H)),                                # W1 (resident)
                cspec((1, H)),                                # b1
                cspec((1, H)),                                # LN gamma
                cspec((1, H)),                                # LN beta
                cspec((H, _LANE)),                            # W2 (lane-padded)
                cspec((1, _LANE)),                            # b2 (lane-padded)
            ]
            out_spec = pl.BlockSpec((tm, _LANE), lambda i: (i, 0))
            scratch = []
            dims = ("parallel",)
        else:
            def cspec(shape):
                if single_buffer:
                    return pl.BlockSpec(shape, lambda i, k: (0, 0),
                                        pipeline_mode=pl.Buffered(1))
                return pl.BlockSpec(shape, lambda i, k: (0, 0))
            grid = (n_tiles, kt)
            kernel = functools.partial(_disc_kernel_streamed, eps=eps,
                                       approx_gelu=approx_gelu)
            in_specs = [
                pl.BlockSpec((tm, tk), lambda i, k: (i, k)),  # x row tile
                pl.BlockSpec((tk, H), lambda i, k: (k, 0)),   # W1 stripe (streamed)
                cspec((1, H)),                                # b1
                cspec((1, H)),                                # LN gamma
                cspec((1, H)),                                # LN beta
                cspec((H, _LANE)),                            # W2 (lane-padded)
                cspec((1, _LANE)),                            # b2 (lane-padded)
            ]
            out_spec = pl.BlockSpec((tm, _LANE), lambda i, k: (i, 0))
            scratch = [pltpu.VMEM((tm, H), jnp.float32)]
            dims = ("parallel", "arbitrary")

        return pl.pallas_call(
            kernel,
            out_shape=jax.ShapeDtypeStruct((n_pad, _LANE), out_dtype),
            grid_spec=pltpu.PrefetchScalarGridSpec(
                num_scalar_prefetch=0,
                grid=grid,
                in_specs=in_specs,
                out_specs=out_spec,
                scratch_shapes=scratch),
            compiler_params=pltpu.CompilerParams(
                dimension_semantics=dims,
                vmem_limit_bytes=vmem_limit),
            cost_estimate=cost,
        )(x, w1, prepared["b1"], prepared["gamma"], prepared["beta"],
          prepared["w2"], prepared["b2"])

    try:
        out = _run(single_buffer=True)
    except Exception:
        # pl.Buffered(1) not supported on this jax version -> default buffering.
        out = _run(single_buffer=False)

    logits = out[:N, :_NUM_CLASSES]
    return logits.reshape(*orig_shape[:-1], _NUM_CLASSES)


def init_params(key, hidden_size):
    k1, k2, k3 = jax.random.split(key, 3)
    scale = 1.0 / math.sqrt(hidden_size)
    return {
        "dense_w": jax.random.uniform(k1, (hidden_size, hidden_size),
                                      jnp.float32, -scale, scale),
        "dense_b": jax.random.uniform(k2, (hidden_size,), jnp.float32,
                                      -scale, scale),
        "ln_w": jnp.ones((hidden_size,), jnp.float32),
        "ln_b": jnp.zeros((hidden_size,), jnp.float32),
        "dec_w": jax.random.uniform(k3, (2, hidden_size), jnp.float32,
                                    -scale, scale),
        # PyTorch module ties decoder.bias to a fresh zero Parameter of shape (2,)
        "dec_b": jnp.zeros((2,), jnp.float32),
    }


def _reference(features, params, eps=LAYER_NORM_EPS):
    x = features @ params["dense_w"].T + params["dense_b"]
    x = jax.nn.gelu(x, approximate=False)
    mean = x.mean(-1, keepdims=True)
    var = ((x - mean) ** 2).mean(-1, keepdims=True)
    x = (x - mean) / jnp.sqrt(var + eps)
    x = x * params["ln_w"] + params["ln_b"]
    return x @ params["dec_w"].T + params["dec_b"]


if __name__ == "__main__":
    key = jax.random.PRNGKey(0)
    kx, kp, kx2, kx3 = jax.random.split(key, 4)

    # 1) f32, resident-W1 fused path
    batch, seq, hidden = 2, 8, 32
    feats = jax.random.normal(kx, (batch, seq, hidden), jnp.float32)
    params = init_params(kp, hidden)
    prepared_f32 = prepare_params(params)
    out = jax.block_until_ready(discriminator_forward(feats, prepared_f32))
    ref = _reference(feats, params)
    assert out.shape == (batch, seq, 2), out.shape
    assert jnp.allclose(out, ref, atol=1e-4, rtol=1e-4), (
        float(jnp.max(jnp.abs(out - ref))))

    # 2) ragged row count exercises the padding path
    feats2 = jax.random.normal(kx2, (3, 5, hidden), jnp.float32)
    out2 = jax.block_until_ready(discriminator_forward(feats2, prepared_f32))
    ref2 = _reference(feats2, params)
    assert out2.shape == (3, 5, 2), out2.shape
    assert jnp.allclose(out2, ref2, atol=1e-4, rtol=1e-4), (
        float(jnp.max(jnp.abs(out2 - ref2))))

    # 3) bf16 fast path: both matmul operands bf16, f32 accumulation
    prepared_bf16 = prepare_params(params, compute_dtype=jnp.bfloat16)
    out3 = jax.block_until_ready(discriminator_forward(feats, prepared_bf16))
    assert out3.shape == (batch, seq, 2), out3.shape
    assert jnp.allclose(out3, ref, atol=5e-2, rtol=5e-2), (
        float(jnp.max(jnp.abs(out3 - ref))))

    # 4) streamed-W1 path (kt > 1) with a lane-aligned hidden size
    hidden2 = 256
    params2 = init_params(jax.random.PRNGKey(1), hidden2)
    prepared2 = prepare_params(params2)
    feats3 = jax.random.normal(kx3, (2, 8, hidden2), jnp.float32)
    out4 = jax.block_until_ready(
        discriminator_forward(feats3, prepared2, force_stream=True, tk_max=128))
    ref4 = _reference(feats3, params2)
    assert out4.shape == (2, 8, 2), out4.shape
    assert jnp.allclose(out4, ref4, atol=2e-3, rtol=2e-3), (
        float(jnp.max(jnp.abs(out4 - ref4))))

    print("KERNEL_OK")
</pallas_src>

<mosaic_0001>
module attributes {stable_mosaic.version = 11 : i64} {
  func.func @_disc_kernel_fused(%arg0: i32, %arg1: memref<16x32xf32, #tpu.memory_space<vmem>>, %arg2: memref<32x32xf32, #tpu.memory_space<vmem>>, %arg3: memref<1x32xf32, #tpu.memory_space<vmem>>, %arg4: memref<1x32xf32, #tpu.memory_space<vmem>>, %arg5: memref<1x32xf32, #tpu.memory_space<vmem>>, %arg6: memref<32x128xf32, #tpu.memory_space<vmem>>, %arg7: memref<1x128xf32, #tpu.memory_space<vmem>>, %arg8: memref<16x128xf32, #tpu.memory_space<vmem>>) attributes {dimension_semantics = [#tpu.dimension_semantics<parallel>], iteration_bounds = array<i64: 1>, scalar_prefetch = 0 : i64, scratch_operands = 0 : i64, tpu.core_type = #tpu.core_type<tc>, window_params = [{transform_indices = @transform_0, window_bounds = array<i64: 16, 32>}, {pipeline_mode = #tpu.pipeline_mode<synchronous>, transform_indices = @transform_1, window_bounds = array<i64: 32, 32>}, {pipeline_mode = #tpu.pipeline_mode<synchronous>, transform_indices = @transform_2, window_bounds = array<i64: 1, 32>}, {pipeline_mode = #tpu.pipeline_mode<synchronous>, transform_indices = @transform_3, window_bounds = array<i64: 1, 32>}, {pipeline_mode = #tpu.pipeline_mode<synchronous>, transform_indices = @transform_4, window_bounds = array<i64: 1, 32>}, {pipeline_mode = #tpu.pipeline_mode<synchronous>, transform_indices = @transform_5, window_bounds = array<i64: 32, 128>}, {pipeline_mode = #tpu.pipeline_mode<synchronous>, transform_indices = @transform_6, window_bounds = array<i64: 1, 128>}, {transform_indices = @transform_7, window_bounds = array<i64: 16, 128>}]} {
    %c0 = arith.constant 0 : index
    %c0_0 = arith.constant 0 : index
    %0 = vector.load %arg1[%c0, %c0_0] : memref<16x32xf32, #tpu.memory_space<vmem>>, vector<16x32xf32>
    %c0_1 = arith.constant 0 : index
    %c0_2 = arith.constant 0 : index
    %1 = vector.load %arg2[%c0_1, %c0_2] : memref<32x32xf32, #tpu.memory_space<vmem>>, vector<32x32xf32>
    %cst = arith.constant dense<0.000000e+00> : vector<16x32xf32>
    %2 = tpu.matmul %0, %1, %cst {dimension_numbers = #tpu.dot_dimension_numbers<[1], [0], [0], [1], [0, 0, 1, 1], [], []>} : vector<16x32xf32>, vector<32x32xf32>, vector<16x32xf32> -> vector<16x32xf32>
    %c0_3 = arith.constant 0 : index
    %c0_4 = arith.constant 0 : index
    %3 = vector.load %arg3[%c0_3, %c0_4] : memref<1x32xf32, #tpu.memory_space<vmem>>, vector<1x32xf32>
    %c0_5 = arith.constant 0 : index
    %c0_6 = arith.constant 0 : index
    %4 = vector.load %arg4[%c0_5, %c0_6] : memref<1x32xf32, #tpu.memory_space<vmem>>, vector<1x32xf32>
    %c0_7 = arith.constant 0 : index
    %c0_8 = arith.constant 0 : index
    %5 = vector.load %arg5[%c0_7, %c0_8] : memref<1x32xf32, #tpu.memory_space<vmem>>, vector<1x32xf32>
    %c0_9 = arith.constant 0 : index
    %c0_10 = arith.constant 0 : index
    %6 = vector.load %arg6[%c0_9, %c0_10] : memref<32x128xf32, #tpu.memory_space<vmem>>, vector<32x128xf32>
    %c0_11 = arith.constant 0 : index
    %c0_12 = arith.constant 0 : index
    %7 = vector.load %arg7[%c0_11, %c0_12] : memref<1x128xf32, #tpu.memory_space<vmem>>, vector<1x128xf32>
    %8 = vector.broadcast %3 : vector<1x32xf32> to vector<16x32xf32>
    %9 = arith.addf %2, %8 : vector<16x32xf32>
    %cst_13 = arith.constant 5.000000e-01 : f32
    %10 = vector.broadcast %cst_13 : f32 to vector<16x32xf32>
    %11 = arith.mulf %10, %9 : vector<16x32xf32>
    %cst_14 = arith.constant 0.707106769 : f32
    %12 = vector.broadcast %cst_14 : f32 to vector<16x32xf32>
    %13 = arith.mulf %9, %12 : vector<16x32xf32>
    %14 = math.erf %13 : vector<16x32xf32>
    %cst_15 = arith.constant 1.000000e+00 : f32
    %15 = vector.broadcast %cst_15 : f32 to vector<16x32xf32>
    %16 = arith.addf %15, %14 : vector<16x32xf32>
    %17 = arith.mulf %11, %16 : vector<16x32xf32>
    %cst_16 = arith.constant dense<0.000000e+00> : vector<16xf32>
    %18 = vector.multi_reduction <add>, %17, %cst_16 [1] : vector<16x32xf32> to vector<16xf32>
    %19 = vector.shape_cast %18 : vector<16xf32> to vector<16x1xf32>
    %cst_17 = arith.constant 3.200000e+01 : f32
    %20 = vector.broadcast %cst_17 : f32 to vector<16x1xf32>
    %21 = arith.divf %19, %20 : vector<16x1xf32>
    %22 = vector.broadcast %21 : vector<16x1xf32> to vector<16x32xf32>
    %23 = arith.subf %17, %22 : vector<16x32xf32>
    %24 = arith.mulf %23, %23 : vector<16x32xf32>
    %cst_18 = arith.constant dense<0.000000e+00> : vector<16xf32>
    %25 = vector.multi_reduction <add>, %24, %cst_18 [1] : vector<16x32xf32> to vector<16xf32>
    %26 = vector.shape_cast %25 : vector<16xf32> to vector<16x1xf32>
    %cst_19 = arith.constant 3.200000e+01 : f32
    %27 = vector.broadcast %cst_19 : f32 to vector<16x1xf32>
    %28 = arith.divf %26, %27 : vector<16x1xf32>
    %cst_20 = arith.constant 9.99999974E-6 : f32
    %29 = vector.broadcast %cst_20 : f32 to vector<16x1xf32>
    %30 = arith.addf %28, %29 : vector<16x1xf32>
    %31 = math.rsqrt %30 : vector<16x1xf32>
    %32 = vector.broadcast %31 : vector<16x1xf32> to vector<16x32xf32>
    %33 = arith.mulf %23, %32 : vector<16x32xf32>
    %34 = vector.broadcast %4 : vector<1x32xf32> to vector<16x32xf32>
    %35 = arith.mulf %33, %34 : vector<16x32xf32>
    %36 = vector.broadcast %5 : vector<1x32xf32> to vector<16x32xf32>
    %37 = arith.addf %35, %36 : vector<16x32xf32>
    %cst_21 = arith.constant dense<0.000000e+00> : vector<16x128xf32>
    %38 = tpu.matmul %37, %6, %cst_21 {dimension_numbers = #tpu.dot_dimension_numbers<[1], [0], [0], [1], [0, 0, 1, 1], [], []>} : vector<16x32xf32>, vector<32x128xf32>, vector<16x128xf32> -> vector<16x128xf32>
    %39 = vector.broadcast %7 : vector<1x128xf32> to vector<16x128xf32>
    %40 = arith.addf %38, %39 : vector<16x128xf32>
    %c0_22 = arith.constant 0 : index
    %c0_23 = arith.constant 0 : index
    %41 = vector.load %arg8[%c0_22, %c0_23] : memref<16x128xf32, #tpu.memory_space<vmem>>, vector<16x128xf32>
    tpu.vector_store %arg8[%c0_22, %c0_23], %40 {strides = array<i32>} : memref<16x128xf32, #tpu.memory_space<vmem>>, vector<16x128xf32>,
    return
  }
  func.func @transform_0(%arg0: i32) -> (i32, i32) {
    %c0_i32 = arith.constant 0 : i32
    %c0_i32_0 = arith.constant 0 : i32
    return %arg0, %c0_i32 : i32, i32
  }
  func.func @transform_1(%arg0: i32) -> (i32, i32) {
    %c0_i32 = arith.constant 0 : i32
    %c0_i32_0 = arith.constant 0 : i32
    %c0_i32_1 = arith.constant 0 : i32
    return %c0_i32, %c0_i32_0 : i32, i32
  }
  func.func @transform_2(%arg0: i32) -> (i32, i32) {
    %c0_i32 = arith.constant 0 : i32
    %c0_i32_0 = arith.constant 0 : i32
    %c0_i32_1 = arith.constant 0 : i32
    return %c0_i32, %c0_i32_0 : i32, i32
  }
  func.func @transform_3(%arg0: i32) -> (i32, i32) {
    %c0_i32 = arith.constant 0 : i32
    %c0_i32_0 = arith.constant 0 : i32
    %c0_i32_1 = arith.constant 0 : i32
    return %c0_i32, %c0_i32_0 : i32, i32
  }
  func.func @transform_4(%arg0: i32) -> (i32, i32) {
    %c0_i32 = arith.constant 0 : i32
    %c0_i32_0 = arith.constant 0 : i32
    %c0_i32_1 = arith.constant 0 : i32
    return %c0_i32, %c0_i32_0 : i32, i32
  }
  func.func @transform_5(%arg0: i32) -> (i32, i32) {
    %c0_i32 = arith.constant 0 : i32
    %c0_i32_0 = arith.constant 0 : i32
    %c0_i32_1 = arith.constant 0 : i32
    return %c0_i32, %c0_i32_0 : i32, i32
  }
  func.func @transform_6(%arg0: i32) -> (i32, i32) {
    %c0_i32 = arith.constant 0 : i32
    %c0_i32_0 = arith.constant 0 : i32
    %c0_i32_1 = arith.constant 0 : i32
    return %c0_i32, %c0_i32_0 : i32, i32
  }
  func.func @transform_7(%arg0: i32) -> (i32, i32) {
    %c0_i32 = arith.constant 0 : i32
    %c0_i32_0 = arith.constant 0 : i32
    return %arg0, %c0_i32 : i32, i32
  }
}

module attributes {stable_mosaic.version = 11 : i64} {
  func.func @_disc_kernel_fused(%arg0: i32, %arg1: memref<16x32xf32, #tpu.memory_space<vmem>>, %arg2: memref<32x32xf32, #tpu.memory_space<vmem>>, %arg3: memref<1x32xf32, #tpu.memory_space<vmem>>, %arg4: memref<1x32xf32, #tpu.memory_space<vmem>>, %arg5: memref<1x32xf32, #tpu.memory_space<vmem>>, %arg6: memref<32x128xf32, #tpu.memory_space<vmem>>, %arg7: memref<1x128xf32, #tpu.memory_space<vmem>>, %arg8: memref<16x128xf32, #tpu.memory_space<vmem>>) attributes {dimension_semantics = [#tpu.dimension_semantics<parallel>], iteration_bounds = array<i64: 1>, scalar_prefetch = 0 : i64, scratch_operands = 0 : i64, tpu.core_type = #tpu.core_type<tc>, window_params = [{transform_indices = @transform_0, window_bounds = array<i64: 16, 32>}, {pipeline_mode = #tpu.pipeline_mode<synchronous>, transform_indices = @transform_1, window_bounds = array<i64: 32, 32>}, {pipeline_mode = #tpu.pipeline_mode<synchronous>, transform_indices = @transform_2, window_bounds = array<i64: 1, 32>}, {pipeline_mode = #tpu.pipeline_mode<synchronous>, transform_indices = @transform_3, window_bounds = array<i64: 1, 32>}, {pipeline_mode = #tpu.pipeline_mode<synchronous>, transform_indices = @transform_4, window_bounds = array<i64: 1, 32>}, {pipeline_mode = #tpu.pipeline_mode<synchronous>, transform_indices = @transform_5, window_bounds = array<i64: 32, 128>}, {pipeline_mode = #tpu.pipeline_mode<synchronous>, transform_indices = @transform_6, window_bounds = array<i64: 1, 128>}, {transform_indices = @transform_7, window_bounds = array<i64: 16, 128>}]} {
    %c0 = arith.constant 0 : index
    %c0_0 = arith.constant 0 : index
    %0 = vector.load %arg1[%c0, %c0_0] : memref<16x32xf32, #tpu.memory_space<vmem>>, vector<16x32xf32>
    %c0_1 = arith.constant 0 : index
    %c0_2 = arith.constant 0 : index
    %1 = vector.load %arg2[%c0_1, %c0_2] : memref<32x32xf32, #tpu.memory_space<vmem>>, vector<32x32xf32>
    %cst = arith.constant dense<0.000000e+00> : vector<16x32xf32>
    %2 = tpu.matmul %0, %1, %cst {dimension_numbers = #tpu.dot_dimension_numbers<[1], [0], [0], [1], [0, 0, 1, 1], [], []>} : vector<16x32xf32>, vector<32x32xf32>, vector<16x32xf32> -> vector<16x32xf32>
    %c0_3 = arith.constant 0 : index
    %c0_4 = arith.constant 0 : index
    %3 = vector.load %arg3[%c0_3, %c0_4] : memref<1x32xf32, #tpu.memory_space<vmem>>, vector<1x32xf32>
    %c0_5 = arith.constant 0 : index
    %c0_6 = arith.constant 0 : index
    %4 = vector.load %arg4[%c0_5, %c0_6] : memref<1x32xf32, #tpu.memory_space<vmem>>, vector<1x32xf32>
    %c0_7 = arith.constant 0 : index
    %c0_8 = arith.constant 0 : index
    %5 = vector.load %arg5[%c0_7, %c0_8] : memref<1x32xf32, #tpu.memory_space<vmem>>, vector<1x32xf32>
    %c0_9 = arith.constant 0 : index
    %c0_10 = arith.constant 0 : index
    %6 = vector.load %arg6[%c0_9, %c0_10] : memref<32x128xf32, #tpu.memory_space<vmem>>, vector<32x128xf32>
    %c0_11 = arith.constant 0 : index
    %c0_12 = arith.constant 0 : index
    %7 = vector.load %arg7[%c0_11, %c0_12] : memref<1x128xf32, #tpu.memory_space<vmem>>, vector<1x128xf32>
    %8 = vector.broadcast %3 : vector<1x32xf32> to vector<16x32xf32>
    %9 = arith.addf %2, %8 : vector<16x32xf32>
    %cst_13 = arith.constant 5.000000e-01 : f32
    %10 = vector.broadcast %cst_13 : f32 to vector<16x32xf32>
    %11 = arith.mulf %10, %9 : vector<16x32xf32>
    %cst_14 = arith.constant 0.707106769 : f32
    %12 = vector.broadcast %cst_14 : f32 to vector<16x32xf32>
    %13 = arith.mulf %9, %12 : vector<16x32xf32>
    %14 = math.erf %13 : vector<16x32xf32>
    %cst_15 = arith.constant 1.000000e+00 : f32
    %15 = vector.broadcast %cst_15 : f32 to vector<16x32xf32>
    %16 = arith.addf %15, %14 : vector<16x32xf32>
    %17 = arith.mulf %11, %16 : vector<16x32xf32>
    %cst_16 = arith.constant dense<0.000000e+00> : vector<16xf32>
    %18 = vector.multi_reduction <add>, %17, %cst_16 [1] : vector<16x32xf32> to vector<16xf32>
    %19 = vector.shape_cast %18 : vector<16xf32> to vector<16x1xf32>
    %cst_17 = arith.constant 3.200000e+01 : f32
    %20 = vector.broadcast %cst_17 : f32 to vector<16x1xf32>
    %21 = arith.divf %19, %20 : vector<16x1xf32>
    %22 = vector.broadcast %21 : vector<16x1xf32> to vector<16x32xf32>
    %23 = arith.subf %17, %22 : vector<16x32xf32>
    %24 = arith.mulf %23, %23 : vector<16x32xf32>
    %cst_18 = arith.constant dense<0.000000e+00> : vector<16xf32>
    %25 = vector.multi_reduction <add>, %24, %cst_18 [1] : vector<16x32xf32> to vector<16xf32>
    %26 = vector.shape_cast %25 : vector<16xf32> to vector<16x1xf32>
    %cst_19 = arith.constant 3.200000e+01 : f32
    %27 = vector.broadcast %cst_19 : f32 to vector<16x1xf32>
    %28 = arith.divf %26, %27 : vector<16x1xf32>
    %cst_20 = arith.constant 9.99999974E-6 : f32
    %29 = vector.broadcast %cst_20 : f32 to vector<16x1xf32>
    %30 = arith.addf %28, %29 : vector<16x1xf32>
    %31 = math.rsqrt %30 : vector<16x1xf32>
    %32 = vector.broadcast %31 : vector<16x1xf32> to vector<16x32xf32>
    %33 = arith.mulf %23, %32 : vector<16x32xf32>
    %34 = vector.broadcast %4 : vector<1x32xf32> to vector<16x32xf32>
    %35 = arith.mulf %33, %34 : vector<16x32xf32>
    %36 = vector.broadcast %5 : vector<1x32xf32> to vector<16x32xf32>
    %37 = arith.addf %35, %36 : vector<16x32xf32>
    %cst_21 = arith.constant dense<0.000000e+00> : vector<16x128xf32>
    %38 = tpu.matmul %37, %6, %cst_21 {dimension_numbers = #tpu.dot_dimension_numbers<[1], [0], [0], [1], [0, 0, 1, 1], [], []>} : vector<16x32xf32>, vector<32x128xf32>, vector<16x128xf32> -> vector<16x128xf32>
    %39 = vector.broadcast %7 : vector<1x128xf32> to vector<16x128xf32>
    %40 = arith.addf %38, %39 : vector<16x128xf32>
    %c0_22 = arith.constant 0 : index
    %c0_23 = arith.constant 0 : index
    %41 = vector.load %arg8[%c0_22, %c0_23] : memref<16x128xf32, #tpu.memory_space<vmem>>, vector<16x128xf32>
    tpu.vector_store %arg8[%c0_22, %c0_23], %40 {strides = array<i32>} : memref<16x128xf32, #tpu.memory_space<vmem>>, vector<16x128xf32>,
    return
  }
  func.func @transform_0(%arg0: i32) -> (i32, i32) {
    %c0_i32 = arith.constant 0 : i32
    %c0_i32_0 = arith.constant 0 : i32
    return %arg0, %c0_i32 : i32, i32
  }
  func.func @transform_1(%arg0: i32) -> (i32, i32) {
    %c0_i32 = arith.constant 0 : i32
    %c0_i32_0 = arith.constant 0 : i32
    %c0_i32_1 = arith.constant 0 : i32
    return %c0_i32, %c0_i32_0 : i32, i32
  }
  func.func @transform_2(%arg0: i32) -> (i32, i32) {
    %c0_i32 = arith.constant 0 : i32
    %c0_i32_0 = arith.constant 0 : i32
    %c0_i32_1 = arith.constant 0 : i32
    return %c0_i32, %c0_i32_0 : i32, i32
  }
  func.func @transform_3(%arg0: i32) -> (i32, i32) {
    %c0_i32 = arith.constant 0 : i32
    %c0_i32_0 = arith.constant 0 : i32
    %c0_i32_1 = arith.constant 0 : i32
    return %c0_i32, %c0_i32_0 : i32, i32
  }
  func.func @transform_4(%arg0: i32) -> (i32, i32) {
    %c0_i32 = arith.constant 0 : i32
    %c0_i32_0 = arith.constant 0 : i32
    %c0_i32_1 = arith.constant 0 : i32
    return %c0_i32, %c0_i32_0 : i32, i32
  }
  func.func @transform_5(%arg0: i32) -> (i32, i32) {
    %c0_i32 = arith.constant 0 : i32
    %c0_i32_0 = arith.constant 0 : i32
    %c0_i32_1 = arith.constant 0 : i32
    return %c0_i32, %c0_i32_0 : i32, i32
  }
  func.func @transform_6(%arg0: i32) -> (i32, i32) {
    %c0_i32 = arith.constant 0 : i32
    %c0_i32_0 = arith.constant 0 : i32
    %c0_i32_1 = arith.constant 0 : i32
    return %c0_i32, %c0_i32_0 : i32, i32
  }
  func.func @transform_7(%arg0: i32) -> (i32, i32) {
    %c0_i32 = arith.constant 0 : i32
    %c0_i32_0 = arith.constant 0 : i32
    return %arg0, %c0_i32 : i32, i32
  }
}

</mosaic_0001>

<bundles_post_ra>
// kernel: tpu_custom_call.1
= control target key start
LH: loop header
LB: loop body
LE: loop exit
PB: predicated region body
PF: predicated region fallthrough
CT: control target
= control target key end

     0   :  { %12 = vsyncpa [#allocation3], 0  ;;  %s629_s0 = inlined_call_operand.hbm [shape: f32[16,32], index: 0, kind: input, shape index: {}]   ;;  %s630_s1 = inlined_call_operand.hbm [shape: f32[32,32], index: 1, kind: input, shape index: {}]   ;;  %s631_s2 = inlined_call_operand.vmem [shape: f32[1,32], index: 2, kind: input, shape index: {}]   ;;  %s632_s3 = inlined_call_operand.vmem [shape: f32[1,32], index: 3, kind: input, shape index: {}]   ;;  %s633_s4 = inlined_call_operand.vmem [shape: f32[1,32], index: 4, kind: input, shape index: {}]   ;;  %s634_s5 = inlined_call_operand.hbm [shape: f32[32,128], index: 5, kind: input, shape index: {}]   ;;  %s635_s6 = inlined_call_operand.vmem [shape: f32[1,128], index: 6, kind: input, shape index: {}]   ;;  %s636_s7 = inlined_call_operand.hbm [shape: f32[16,128], index: 7, kind: output, shape index: {}]  }
   0x1   :  { %13 = vsyncpa [#allocation6], 0 }
   0x2   :  { %14 = vsyncpa [#allocation4], 0  ;;  %s496_s24 = smov [#allocation5]   ;;  %s497_s26 = smov [#allocation2]  }
   0x3   :  { %s32_s25 = sshll.u32 %s496_s24, 4  ;;  %s20_s27 = sshll.u32 %s497_s26, 4  ;;  %s33_s25 = int_to_ptr.vmem [resolvable:$true] %s32_s25  ;;  %s542_s27 = int_to_ptr.vmem [resolvable:$true] %s20_s27 }
   0x4   :  { %s402_s30 = scalar_lea.hbm %s630_s1, 512 }
   0x5   :  { %p403_p0 = scmp.ne.s32.totalorder %s630_s1, %s402_s30  ;;  %p406_p1 = scmp.lt.u32.totalorder %s402_s30, %s630_s1 }
   0x7   :  { %p408_p2 = pnand %p406_p1, %p403_p0 }
   0x9   :  { %411 = shalt.err (!%p408_p2)
}
   0xa   :  { %s412_s12 = scalar_lea.vmem %s33_s25, 512  ;;  %p417_p4 = scmp.lt.s32.totalorder %s33_s25, %s33_s25 }
   0xb   :  { %p413_p3 = scmp.ne.s32.totalorder %s33_s25, %s412_s12  ;;  %p418_p5 = scmp.lt.s32.totalorder %s412_s12, %s412_s12 }
   0xd   :  { %p419_p6 = por %p418_p5, %p417_p4 }
   0xf   :  { %p420_p7 = pnand %p419_p6, %p413_p3 }
  0x11   :  { %423 = shalt.err (!%p420_p7)
}
  0x12   :  { %s498_s13 = smov 128   ;;  %s499_s14 = smov 8  }
  0x13   :  { %38 = dma.hbm_to_vmem [thread:$0]  %s630_s1, 512, %s33_s25, [#allocation6], %s498_s13, %s498_s13, %s499_s14  }
  0x14   :  { %s424_s19 = scalar_lea.hbm %s629_s0, 256 }
  0x15   :  { %p425_p8 = scmp.ne.s32.totalorder %s629_s0, %s424_s19  ;;  %p428_p9 = scmp.lt.u32.totalorder %s424_s19, %s629_s0 }
  0x17   :  { %p430_p10 = pnand %p428_p9, %p425_p8 }
  0x19   :  { %433 = shalt.err (!%p430_p10)
}
  0x1a   :  { %s434_s24 = scalar_lea.vmem %s542_s27, 256  ;;  %p439_p12 = scmp.lt.s32.totalorder %s542_s27, %s542_s27 }
  0x1b   :  { %p435_p11 = scmp.ne.s32.totalorder %s542_s27, %s434_s24  ;;  %p440_p13 = scmp.lt.s32.totalorder %s434_s24, %s434_s24 }
  0x1d   :  { %p441_p0 = por %p440_p13, %p439_p12 }
  0x1f   :  { %p442_p1 = pnand %p441_p0, %p435_p11 }
  0x21   :  { %445 = shalt.err (!%p442_p1)
}
  0x22   :  { %26 = dma.hbm_to_vmem [thread:$0]  %s629_s0, 256, %s542_s27, [#allocation3], %s498_s13, %s498_s13, %s499_s14  }
  0x23   :  { %s500_s26 = smov [#allocation7]   ;;  %s446_s8 = scalar_lea.hbm %s634_s5, 512 }
  0x24   :  { %s50_s28 = sshll.u32 %s500_s26, 4  ;;  %p447_p2 = scmp.ne.s32.totalorder %s634_s5, %s446_s8  ;;  %s51_s28 = int_to_ptr.vmem [resolvable:$true] %s50_s28 }
  0x25   :  { %p450_p3 = scmp.lt.u32.totalorder %s446_s8, %s634_s5 }
  0x27   :  { %p452_p4 = pnand %p450_p3, %p447_p2 }
  0x29   :  { %455 = shalt.err (!%p452_p4)
}
  0x2a   :  { %s456_s15 = scalar_lea.vmem %s51_s28, 512  ;;  %p461_p6 = scmp.lt.s32.totalorder %s51_s28, %s51_s28 }
  0x2b   :  { %p457_p5 = scmp.ne.s32.totalorder %s51_s28, %s456_s15  ;;  %p462_p7 = scmp.lt.s32.totalorder %s456_s15, %s456_s15 }
  0x2d   :  { %p463_p8 = por %p462_p7, %p461_p6 }
  0x2f   :  { %p464_p9 = pnand %p463_p8, %p457_p5 }
  0x31   :  { %467 = shalt.err (!%p464_p9)
}
  0x32   :  { %56 = dma.hbm_to_vmem [thread:$0]  %s634_s5, 512, %s51_s28, [#allocation6], %s498_s13, %s498_s13, %s499_s14  }
  0x33   :  { %490 = dma.done.wait [#allocation3], 256  }
  0x34   :  { %491 = vsyncadd [#allocation3], 4294967040 }
  0x35   :  { %492 = dma.done.wait [#allocation6], 1024  }
  0x36   :  { %493 = vsyncadd [#allocation6], 4294966272  ;;  %vm88_vm0 = vcmask 261120   ;;  %v70_v0 = vld [vmem:[#allocation5] sm:$0xff]  ;;  %v71_v1 = vld [vmem:[#allocation5 + $0x8] sm:$0xff] }
  0x37   :  { %v72_v2 = vld [vmem:[#allocation5 + $0x10] sm:$0xff]  ;;  %v372_v3 = vpack.c.bf16 %v71_v1, %v70_v0  ;;  %v73_v4 = vld [vmem:[#allocation5 + $0x18] sm:$0xff]  ;;  %v77_v35 = vld [vmem:[#allocation7] sm:$0xff] }
  0x38   :  { %v68_v5 = vld [vmem:[#allocation2] sm:$0xff]  ;;  %v376_v6 = vpack.c.bf16 %v73_v4, %v72_v2  ;;  %v69_v7 = vld [vmem:[#allocation2 + $0x8] sm:$0xff]  ;;  %v78_v36 = vld [vmem:[#allocation7 + $0x8] sm:$0xff] }
  0x39   :  { %358 = vmatprep.mubr.msk.f32.mxu0 %vm88_vm0, %v68_v5  ;;  %373 = vmatprep.subr.bf16.mxu0 %v372_v3  ;;  %v330_v8 = vld [vmem:[%s631_s2] ss:$0 sm:$0xff]  ;;  %v380_v38 = vpack.c.bf16 %v78_v36, %v77_v35  ;;  %v80_v39 = vld [vmem:[#allocation7 + $0x18] sm:$0xff] }
  0x3a   :  { %375 = vmatpush3.bf16.msra.mxu0 %v372_v3  ;;  %v79_v37 = vld [vmem:[#allocation7 + $0x10] sm:$0xff] }
  0x3b   :  { %377 = vmatprep.subr.bf16.mxu0 %v376_v6  ;;  %v384_v40 = vpack.c.bf16 %v80_v39, %v79_v37  ;;  %381 = vmatprep.subr.bf16.mxu1 %v380_v38  ;;  %v333_v48 = vld [vmem:[%s632_s3] ss:$0 sm:$0xff]  ;;  %s501_s3 = smov [#allocation8]  }
  0x3c   :  { %383 = vmatpush3.bf16.msra.mxu1 %v380_v38  ;;  %v334_v50 = vld [vmem:[%s633_s4] ss:$0 sm:$0xff]  ;;  %s317_s22 = sshll.u32 %s501_s3, 4  ;;  %s318_s22 = int_to_ptr.vmem [resolvable:$true] %s317_s22 }
  0x3d   :  { %385 = vmatprep.subr.bf16.mxu1 %v384_v40  ;;  %v335_v57 = vld [vmem:[%s635_s6] ss:$0 sm:$0xff]  ;;  %s468_s4 = scalar_lea.vmem %s318_s22, 256  ;;  %p473_p11 = scmp.lt.s32.totalorder %s318_s22, %s318_s22 }
  0x3e   :  { %379 = vmatpush3.bf16.msra.mxu0 %v376_v6  ;;  %p469_p10 = scmp.ne.s32.totalorder %s318_s22, %s468_s4  ;;  %p474_p12 = scmp.lt.s32.totalorder %s468_s4, %s468_s4 }
  0x40   :  { %387 = vmatpush3.bf16.msra.mxu1 %v384_v40  ;;  %p475_p13 = por %p474_p12, %p473_p11 }
  0x41   :  { %359 = vmatmul.mubr.msk.f32.vlgmr.msra.gmra.mrb[0].mxu0 %vm88_vm0, %v69_v7 }
  0x42   :  { %p476_p0 = pnand %p475_p13, %p469_p10 }
 0x114   :  { %v360_v9 = vpop.f32.mrb[0].mxu0 }
 0x115   :  { %v167_v10 = vadd.f32 %v360_v9, %v330_v8  ;;  %v161_v11 = vpop.f32.mrb[1].mxu0 }
 0x116   :  { %v162_v12 = vadd.f32 %v330_v8, %v161_v11 }
 0x117   :  { %v173_v13 = vmul.f32 0.70710677, %v167_v10  ;;  %v171_v20 = vmul.f32 0.5, %v167_v10 }
 0x118   :  { %v172_v14 = vmul.f32 0.70710677, %v162_v12  ;;  %v170_v17 = vmul.f32 0.5, %v162_v12 }
 0x119   :  { %394 = verf.f32 %v173_v13 }
 0x11a   :  { %396 = verf.f32 %v172_v14 }
 0x123   :  { %v395_v15 = vpop.eup %394 }
 0x124   :  { %v397_v16 = vpop.eup %396  ;;  %v177_v19 = vadd.f32 1.0, %v395_v15 }
 0x125   :  { %v176_v18 = vadd.f32 1.0, %v397_v16 }
 0x126   :  { %v179_v23 = vmul.f32 %v177_v19, %v171_v20 }
 0x127   :  { %v178_v21 = vmul.f32 %v176_v18, %v170_v17 }
 0x128   :  { %v183_v24 = vsel %vm88_vm0, %v179_v23, 0.0 }
 0x129   :  { %v180_v22 = vsel %vm88_vm0, %v178_v21, 0.0 }
 0x12a   :  { %181 = vadd.xlane.f32.xlu0 %v180_v22 }
 0x12e   :  { %184 = vadd.xlane.f32.xlu0 %v183_v24 }
 0x1b7   :  { %v182_v25 = vpop.xlane.xlu0 %181 }
 0x1b8   :  { %v187_v26 = vmul.f32 0.03125, %v182_v25 }
 0x1ba   :  { %v189_v27 = vsub.f32 %v178_v21, %v187_v26 }
 0x1bb   :  { %v185_v28 = vpop.xlane.xlu0 %184 }
 0x1bc   :  { %v188_v29 = vmul.f32 0.03125, %v185_v28  ;;  %v191_v30 = vmul.f32 %v189_v27, %v189_v27 }
 0x1be   :  { %v190_v31 = vsub.f32 %v179_v23, %v188_v29  ;;  %v193_v32 = vsel %vm88_vm0, %v191_v30, 0.0 }
 0x1bf   :  { %194 = vadd.xlane.f32.xlu1 %v193_v32 }
 0x1c0   :  { %v192_v33 = vmul.f32 %v190_v31, %v190_v31 }
 0x1c2   :  { %v196_v34 = vsel %vm88_vm0, %v192_v33, 0.0 }
 0x1c3   :  { %197 = vadd.xlane.f32.xlu1 %v196_v34 }
 0x24c   :  { %v195_v41 = vpop.xlane.xlu1 %194 }
 0x24d   :  { %v199_v42 = vmul.f32 0.03125, %v195_v41 }
 0x24f   :  { %v201_v43 = vadd.f32 1e-05, %v199_v42 }
 0x250   :  { %v198_v44 = vpop.xlane.xlu1 %197 }
 0x251   :  { %398 = vrsqrt.f32 %v201_v43  ;;  %v200_v45 = vmul.f32 0.03125, %v198_v44 }
 0x253   :  { %v202_v46 = vadd.f32 1e-05, %v200_v45 }
 0x255   :  { %400 = vrsqrt.f32 %v202_v46 }
 0x25b   :  { %v399_v47 = vpop.eup %398 }
 0x25c   :  { %v205_v49 = vmul.f32 %v399_v47, %v189_v27 }
 0x25e   :  { %v213_v51 = vmul.f32 %v333_v48, %v205_v49 }
 0x25f   :  { %v401_v52 = vpop.eup %400 }
 0x260   :  { %v206_v53 = vmul.f32 %v401_v52, %v190_v31  ;;  %v221_v54 = vadd.f32 %v334_v50, %v213_v51 }
 0x262   :  { %v214_v55 = vmul.f32 %v333_v48, %v206_v53  ;;  %369 = vmatprep.mubr.msk.f32.mxu1 %vm88_vm0, %v221_v54 }
 0x264   :  { %v222_v56 = vadd.f32 %v334_v50, %v214_v55 }
 0x266   :  { %370 = vmatmul.mubr.msk.f32.vlgmr.msra.gmra.mrb[0].mxu1 %vm88_vm0, %v222_v56 }
 0x339   :  { %v371_v58 = vpop.f32.mrb[0].mxu1 }
 0x33a   :  { %v307_v59 = vadd.f32 %v371_v58, %v335_v57  ;;  %v301_v60 = vpop.f32.mrb[1].mxu1 }
 0x33b   :  { %v302_v61 = vadd.f32 %v335_v57, %v301_v60 }
 0x33c   :  { %311 = vst [vmem:[#allocation8 + $0x8] sm:$0xff] %v307_v59 }
 0x33d   :  { %310 = vst [vmem:[#allocation8] sm:$0xff] %v302_v61 }
 0x33e   :  { %479 = shalt.err (!%p476_p0)
}
 0x33f   :  { %s480_s6 = scalar_lea.hbm %s636_s7, 256 }
 0x340   :  { %p481_p1 = scmp.ne.s32.totalorder %s636_s7, %s480_s6  ;;  %p484_p2 = scmp.lt.u32.totalorder %s480_s6, %s636_s7 }
 0x342   :  { %p486_p3 = pnand %p484_p2, %p481_p1 }
 0x344   :  { %489 = shalt.err (!%p486_p3)
}
 0x345   :  { %323 = dma.vmem_to_hbm [thread:$0]  %s318_s22, 256, %s636_s7, [#allocation4], %s498_s13, %s498_s13, %s499_s14  }
 0x346   :  { %494 = dma.done.wait [#allocation4], 256  }
 0x347   :  { %495 = vsyncadd [#allocation4], 4294967040 }
 0x348   :  { %327 = vsyncpa [#allocation3], 1 }
 0x349   :  { %328 = vsyncpa [#allocation6], 1 }
 0x34a   :  { %329 = vsyncpa [#allocation4], 1 }

// kernel: tpu_custom_call.1
= control target key start
LH: loop header
LB: loop body
LE: loop exit
PB: predicated region body
PF: predicated region fallthrough
CT: control target
= control target key end

     0   :  { %12 = vsyncpa [#allocation3], 0  ;;  %s629_s0 = inlined_call_operand.hbm [shape: f32[16,32], index: 0, kind: input, shape index: {}]   ;;  %s630_s1 = inlined_call_operand.hbm [shape: f32[32,32], index: 1, kind: input, shape index: {}]   ;;  %s631_s2 = inlined_call_operand.vmem [shape: f32[1,32], index: 2, kind: input, shape index: {}]   ;;  %s632_s3 = inlined_call_operand.vmem [shape: f32[1,32], index: 3, kind: input, shape index: {}]   ;;  %s633_s4 = inlined_call_operand.vmem [shape: f32[1,32], index: 4, kind: input, shape index: {}]   ;;  %s634_s5 = inlined_call_operand.hbm [shape: f32[32,128], index: 5, kind: input, shape index: {}]   ;;  %s635_s6 = inlined_call_operand.vmem [shape: f32[1,128], index: 6, kind: input, shape index: {}]   ;;  %s636_s7 = inlined_call_operand.hbm [shape: f32[16,128], index: 7, kind: output, shape index: {}]  }
   0x1   :  { %13 = vsyncpa [#allocation6], 0 }
   0x2   :  { %14 = vsyncpa [#allocation4], 0  ;;  %s496_s24 = smov [#allocation5]   ;;  %s497_s26 = smov [#allocation2]  }
   0x3   :  { %s32_s25 = sshll.u32 %s496_s24, 4  ;;  %s20_s27 = sshll.u32 %s497_s26, 4  ;;  %s33_s25 = int_to_ptr.vmem [resolvable:$true] %s32_s25  ;;  %s542_s27 = int_to_ptr.vmem [resolvable:$true] %s20_s27 }
   0x4   :  { %s402_s30 = scalar_lea.hbm %s630_s1, 512 }
   0x5   :  { %p403_p0 = scmp.ne.s32.totalorder %s630_s1, %s402_s30  ;;  %p406_p1 = scmp.lt.u32.totalorder %s402_s30, %s630_s1 }
   0x7   :  { %p408_p2 = pnand %p406_p1, %p403_p0 }
   0x9   :  { %411 = shalt.err (!%p408_p2)
}
   0xa   :  { %s412_s12 = scalar_lea.vmem %s33_s25, 512  ;;  %p417_p4 = scmp.lt.s32.totalorder %s33_s25, %s33_s25 }
   0xb   :  { %p413_p3 = scmp.ne.s32.totalorder %s33_s25, %s412_s12  ;;  %p418_p5 = scmp.lt.s32.totalorder %s412_s12, %s412_s12 }
   0xd   :  { %p419_p6 = por %p418_p5, %p417_p4 }
   0xf   :  { %p420_p7 = pnand %p419_p6, %p413_p3 }
  0x11   :  { %423 = shalt.err (!%p420_p7)
}
  0x12   :  { %s498_s13 = smov 128   ;;  %s499_s14 = smov 8  }
  0x13   :  { %38 = dma.hbm_to_vmem [thread:$0]  %s630_s1, 512, %s33_s25, [#allocation6], %s498_s13, %s498_s13, %s499_s14  }
  0x14   :  { %s424_s19 = scalar_lea.hbm %s629_s0, 256 }
  0x15   :  { %p425_p8 = scmp.ne.s32.totalorder %s629_s0, %s424_s19  ;;  %p428_p9 = scmp.lt.u32.totalorder %s424_s19, %s629_s0 }
  0x17   :  { %p430_p10 = pnand %p428_p9, %p425_p8 }
  0x19   :  { %433 = shalt.err (!%p430_p10)
}
  0x1a   :  { %s434_s24 = scalar_lea.vmem %s542_s27, 256  ;;  %p439_p12 = scmp.lt.s32.totalorder %s542_s27, %s542_s27 }
  0x1b   :  { %p435_p11 = scmp.ne.s32.totalorder %s542_s27, %s434_s24  ;;  %p440_p13 = scmp.lt.s32.totalorder %s434_s24, %s434_s24 }
  0x1d   :  { %p441_p0 = por %p440_p13, %p439_p12 }
  0x1f   :  { %p442_p1 = pnand %p441_p0, %p435_p11 }
  0x21   :  { %445 = shalt.err (!%p442_p1)
}
  0x22   :  { %26 = dma.hbm_to_vmem [thread:$0]  %s629_s0, 256, %s542_s27, [#allocation3], %s498_s13, %s498_s13, %s499_s14  }
  0x23   :  { %s500_s26 = smov [#allocation7]   ;;  %s446_s8 = scalar_lea.hbm %s634_s5, 512 }
  0x24   :  { %s50_s28 = sshll.u32 %s500_s26, 4  ;;  %p447_p2 = scmp.ne.s32.totalorder %s634_s5, %s446_s8  ;;  %s51_s28 = int_to_ptr.vmem [resolvable:$true] %s50_s28 }
  0x25   :  { %p450_p3 = scmp.lt.u32.totalorder %s446_s8, %s634_s5 }
  0x27   :  { %p452_p4 = pnand %p450_p3, %p447_p2 }
  0x29   :  { %455 = shalt.err (!%p452_p4)
}
  0x2a   :  { %s456_s15 = scalar_lea.vmem %s51_s28, 512  ;;  %p461_p6 = scmp.lt.s32.totalorder %s51_s28, %s51_s28 }
  0x2b   :  { %p457_p5 = scmp.ne.s32.totalorder %s51_s28, %s456_s15  ;;  %p462_p7 = scmp.lt.s32.totalorder %s456_s15, %s456_s15 }
  0x2d   :  { %p463_p8 = por %p462_p7, %p461_p6 }
  0x2f   :  { %p464_p9 = pnand %p463_p8, %p457_p5 }
  0x31   :  { %467 = shalt.err (!%p464_p9)
}
  0x32   :  { %56 = dma.hbm_to_vmem [thread:$0]  %s634_s5, 512, %s51_s28, [#allocation6], %s498_s13, %s498_s13, %s499_s14  }
  0x33   :  { %490 = dma.done.wait [#allocation3], 256  }
  0x34   :  { %491 = vsyncadd [#allocation3], 4294967040 }
  0x35   :  { %492 = dma.done.wait [#allocation6], 1024  }
  0x36   :  { %493 = vsyncadd [#allocation6], 4294966272  ;;  %vm88_vm0 = vcmask 261120   ;;  %v70_v0 = vld [vmem:[#allocation5] sm:$0xff]  ;;  %v71_v1 = vld [vmem:[#allocation5 + $0x8] sm:$0xff] }
  0x37   :  { %v72_v2 = vld [vmem:[#allocation5 + $0x10] sm:$0xff]  ;;  %v372_v3 = vpack.c.bf16 %v71_v1, %v70_v0  ;;  %v73_v4 = vld [vmem:[#allocation5 + $0x18] sm:$0xff]  ;;  %v77_v35 = vld [vmem:[#allocation7] sm:$0xff] }
  0x38   :  { %v68_v5 = vld [vmem:[#allocation2] sm:$0xff]  ;;  %v376_v6 = vpack.c.bf16 %v73_v4, %v72_v2  ;;  %v69_v7 = vld [vmem:[#allocation2 + $0x8] sm:$0xff]  ;;  %v78_v36 = vld [vmem:[#allocation7 + $0x8] sm:$0xff] }
  0x39   :  { %358 = vmatprep.mubr.msk.f32.mxu0 %vm88_vm0, %v68_v5  ;;  %373 = vmatprep.subr.bf16.mxu0 %v372_v3  ;;  %v330_v8 = vld [vmem:[%s631_s2] ss:$0 sm:$0xff]  ;;  %v380_v38 = vpack.c.bf16 %v78_v36, %v77_v35  ;;  %v80_v39 = vld [vmem:[#allocation7 + $0x18] sm:$0xff] }
  0x3a   :  { %375 = vmatpush3.bf16.msra.mxu0 %v372_v3  ;;  %v79_v37 = vld [vmem:[#allocation7 + $0x10] sm:$0xff] }
  0x3b   :  { %377 = vmatprep.subr.bf16.mxu0 %v376_v6  ;;  %v384_v40 = vpack.c.bf16 %v80_v39, %v79_v37  ;;  %381 = vmatprep.subr.bf16.mxu1 %v380_v38  ;;  %v333_v48 = vld [vmem:[%s632_s3] ss:$0 sm:$0xff]  ;;  %s501_s3 = smov [#allocation8]  }
  0x3c   :  { %383 = vmatpush3.bf16.msra.mxu1 %v380_v38  ;;  %v334_v50 = vld [vmem:[%s633_s4] ss:$0 sm:$0xff]  ;;  %s317_s22 = sshll.u32 %s501_s3, 4  ;;  %s318_s22 = int_to_ptr.vmem [resolvable:$true] %s317_s22 }
  0x3d   :  { %385 = vmatprep.subr.bf16.mxu1 %v384_v40  ;;  %v335_v57 = vld [vmem:[%s635_s6] ss:$0 sm:$0xff]  ;;  %s468_s4 = scalar_lea.vmem %s318_s22, 256  ;;  %p473_p11 = scmp.lt.s32.totalorder %s318_s22, %s318_s22 }
  0x3e   :  { %379 = vmatpush3.bf16.msra.mxu0 %v376_v6  ;;  %p469_p10 = scmp.ne.s32.totalorder %s318_s22, %s468_s4  ;;  %p474_p12 = scmp.lt.s32.totalorder %s468_s4, %s468_s4 }
  0x40   :  { %387 = vmatpush3.bf16.msra.mxu1 %v384_v40  ;;  %p475_p13 = por %p474_p12, %p473_p11 }
  0x41   :  { %359 = vmatmul.mubr.msk.f32.vlgmr.msra.gmra.mrb[0].mxu0 %vm88_vm0, %v69_v7 }
  0x42   :  { %p476_p0 = pnand %p475_p13, %p469_p10 }
 0x114   :  { %v360_v9 = vpop.f32.mrb[0].mxu0 }
 0x115   :  { %v167_v10 = vadd.f32 %v360_v9, %v330_v8  ;;  %v161_v11 = vpop.f32.mrb[1].mxu0 }
 0x116   :  { %v162_v12 = vadd.f32 %v330_v8, %v161_v11 }
 0x117   :  { %v173_v13 = vmul.f32 0.70710677, %v167_v10  ;;  %v171_v20 = vmul.f32 0.5, %v167_v10 }
 0x118   :  { %v172_v14 = vmul.f32 0.70710677, %v162_v12  ;;  %v170_v17 = vmul.f32 0.5, %v162_v12 }
 0x119   :  { %394 = verf.f32 %v173_v13 }
 0x11a   :  { %396 = verf.f32 %v172_v14 }
 0x123   :  { %v395_v15 = vpop.eup %394 }
 0x124   :  { %v397_v16 = vpop.eup %396  ;;  %v177_v19 = vadd.f32 1.0, %v395_v15 }
 0x125   :  { %v176_v18 = vadd.f32 1.0, %v397_v16 }
 0x126   :  { %v179_v23 = vmul.f32 %v177_v19, %v171_v20 }
 0x127   :  { %v178_v21 = vmul.f32 %v176_v18, %v170_v17 }
 0x128   :  { %v183_v24 = vsel %vm88_vm0, %v179_v23, 0.0 }
 0x129   :  { %v180_v22 = vsel %vm88_vm0, %v178_v21, 0.0 }
 0x12a   :  { %181 = vadd.xlane.f32.xlu0 %v180_v22 }
 0x12e   :  { %184 = vadd.xlane.f32.xlu0 %v183_v24 }
 0x1b7   :  { %v182_v25 = vpop.xlane.xlu0 %181 }
 0x1b8   :  { %v187_v26 = vmul.f32 0.03125, %v182_v25 }
 0x1ba   :  { %v189_v27 = vsub.f32 %v178_v21, %v187_v26 }
 0x1bb   :  { %v185_v28 = vpop.xlane.xlu0 %184 }
 0x1bc   :  { %v188_v29 = vmul.f32 0.03125, %v185_v28  ;;  %v191_v30 = vmul.f32 %v189_v27, %v189_v27 }
 0x1be   :  { %v190_v31 = vsub.f32 %v179_v23, %v188_v29  ;;  %v193_v32 = vsel %vm88_vm0, %v191_v30, 0.0 }
 0x1bf   :  { %194 = vadd.xlane.f32.xlu1 %v193_v32 }
 0x1c0   :  { %v192_v33 = vmul.f32 %v190_v31, %v190_v31 }
 0x1c2   :  { %v196_v34 = vsel %vm88_vm0, %v192_v33, 0.0 }
 0x1c3   :  { %197 = vadd.xlane.f32.xlu1 %v196_v34 }
 0x24c   :  { %v195_v41 = vpop.xlane.xlu1 %194 }
 0x24d   :  { %v199_v42 = vmul.f32 0.03125, %v195_v41 }
 0x24f   :  { %v201_v43 = vadd.f32 1e-05, %v199_v42 }
 0x250   :  { %v198_v44 = vpop.xlane.xlu1 %197 }
 0x251   :  { %398 = vrsqrt.f32 %v201_v43  ;;  %v200_v45 = vmul.f32 0.03125, %v198_v44 }
 0x253   :  { %v202_v46 = vadd.f32 1e-05, %v200_v45 }
 0x255   :  { %400 = vrsqrt.f32 %v202_v46 }
 0x25b   :  { %v399_v47 = vpop.eup %398 }
 0x25c   :  { %v205_v49 = vmul.f32 %v399_v47, %v189_v27 }
 0x25e   :  { %v213_v51 = vmul.f32 %v333_v48, %v205_v49 }
 0x25f   :  { %v401_v52 = vpop.eup %400 }
 0x260   :  { %v206_v53 = vmul.f32 %v401_v52, %v190_v31  ;;  %v221_v54 = vadd.f32 %v334_v50, %v213_v51 }
 0x262   :  { %v214_v55 = vmul.f32 %v333_v48, %v206_v53  ;;  %369 = vmatprep.mubr.msk.f32.mxu1 %vm88_vm0, %v221_v54 }
 0x264   :  { %v222_v56 = vadd.f32 %v334_v50, %v214_v55 }
 0x266   :  { %370 = vmatmul.mubr.msk.f32.vlgmr.msra.gmra.mrb[0].mxu1 %vm88_vm0, %v222_v56 }
 0x339   :  { %v371_v58 = vpop.f32.mrb[0].mxu1 }
 0x33a   :  { %v307_v59 = vadd.f32 %v371_v58, %v335_v57  ;;  %v301_v60 = vpop.f32.mrb[1].mxu1 }
 0x33b   :  { %v302_v61 = vadd.f32 %v335_v57, %v301_v60 }
 0x33c   :  { %311 = vst [vmem:[#allocation8 + $0x8] sm:$0xff] %v307_v59 }
 0x33d   :  { %310 = vst [vmem:[#allocation8] sm:$0xff] %v302_v61 }
 0x33e   :  { %479 = shalt.err (!%p476_p0)
}
 0x33f   :  { %s480_s6 = scalar_lea.hbm %s636_s7, 256 }
 0x340   :  { %p481_p1 = scmp.ne.s32.totalorder %s636_s7, %s480_s6  ;;  %p484_p2 = scmp.lt.u32.totalorder %s480_s6, %s636_s7 }
 0x342   :  { %p486_p3 = pnand %p484_p2, %p481_p1 }
 0x344   :  { %489 = shalt.err (!%p486_p3)
}
 0x345   :  { %323 = dma.vmem_to_hbm [thread:$0]  %s318_s22, 256, %s636_s7, [#allocation4], %s498_s13, %s498_s13, %s499_s14  }
 0x346   :  { %494 = dma.done.wait [#allocation4], 256  }
 0x347   :  { %495 = vsyncadd [#allocation4], 4294967040 }
 0x348   :  { %327 = vsyncpa [#allocation3], 1 }
 0x349   :  { %328 = vsyncpa [#allocation6], 1 }
 0x34a   :  { %329 = vsyncpa [#allocation4], 1 }

</bundles_post_ra>
